<compile_context>
chip_gen: v7x
topology: tpu7x:2x2x1
jax: 0.10.0
libtpu: 0.0.40
codegen_flags: <defaults>
</compile_context>

<pallas_src>
import jax
import jax.numpy as jnp
from jax.experimental import pallas as pl
from jax.experimental.pallas import tpu as pltpu

K_IN = 500          # nn.Linear in_features
N_OUT = 10          # num_classes
N_PAD = 128         # output padded to a full vreg lane width (zero weight/bias cols)


def _round_up(x, m):
    return ((x + m - 1) // m) * m


# ---------------------------------------------------------------------------
# Pallas kernel: one (tm, 500) x (500, 128) matmul + bias per grid step.
# bf16 MXU feed, f32 accumulate, f32 bias add.
# ---------------------------------------------------------------------------
def _linear_kernel(x_ref, w_ref, b_ref, o_ref):
    acc = jnp.dot(x_ref[...].astype(jnp.bfloat16), w_ref[...],
                  preferred_element_type=jnp.float32)
    o_ref[...] = (acc + b_ref[...]).astype(o_ref.dtype)


def pack_linear_params(fc_w, fc_b):
    """torch layout (N_OUT, K_IN), (N_OUT,) -> lane-dense (K_IN, N_PAD) bf16, (1, N_PAD) f32.

    Done ONCE, outside the per-forward path.  Zero-padded columns are exact.
    """
    w = (jnp.zeros((K_IN, N_PAD), jnp.float32)
         .at[:, :N_OUT].set(fc_w.T)
         .astype(jnp.bfloat16))
    b = jnp.zeros((1, N_PAD), jnp.float32).at[0, :N_OUT].set(fc_b)
    return w, b


def linear_classifier_forward(features, w_packed, b_packed, *, tile_m=2048):
    """features: (B, 500) f32 -> logits (B, 10) f32."""
    m, k = features.shape
    assert k == K_IN

    # >= 2 M tiles when the batch allows (v7x megacore), tile a multiple of 8,
    # capped at tile_m (VMEM-safe on all generations).  Ragged last block is fine.
    tm = min(tile_m, max(8, _round_up(pl.cdiv(m, 2), 8)))
    grid_m = pl.cdiv(m, tm)

    out = pl.pallas_call(
        _linear_kernel,
        out_shape=jax.ShapeDtypeStruct((m, N_PAD), jnp.float32),
        grid=(grid_m,),
        in_specs=[
            # Activations: tiled over M, unpadded K=500 (== full array dim -> legal).
            pl.BlockSpec((tm, K_IN), lambda i: (i, 0)),
            # Weights: resident, constant block index -> DMA'd once.
            pl.BlockSpec((K_IN, N_PAD), lambda i: (0, 0)),
            # Bias: resident.
            pl.BlockSpec((1, N_PAD), lambda i: (0, 0)),
        ],
        out_specs=pl.BlockSpec((tm, N_PAD), lambda i: (i, 0)),
        compiler_params=pltpu.CompilerParams(
            dimension_semantics=("parallel",)),
    )(features, w_packed, b_packed)

    # Keep the (B, 10) nn.Linear signature; consumers that can mask the 118 dead
    # classes may consume the lane-dense (B, 128) slab directly instead.
    return out[:, :N_OUT]


# ---------------------------------------------------------------------------
# Pure-JAX reference (mirrors nn.Linear exactly, f32)
# ---------------------------------------------------------------------------
def linear_classifier_reference(features, fc_w, fc_b):
    return features @ fc_w.T + fc_b


if __name__ == "__main__":
    key = jax.random.PRNGKey(0)
    kx, kw, kb = jax.random.split(key, 3)

    batch = 8
    features = jax.random.normal(kx, (batch, K_IN), dtype=jnp.float32)

    # torch nn.Linear default init: U(-1/sqrt(fan_in), 1/sqrt(fan_in))
    bound = 1.0 / jnp.sqrt(float(K_IN))
    fc_w = jax.random.uniform(kw, (N_OUT, K_IN), jnp.float32, -bound, bound)
    fc_b = jax.random.uniform(kb, (N_OUT,), jnp.float32, -bound, bound)

    # Pre-pack weights once (outside the per-call path).
    w_packed, b_packed = pack_linear_params(fc_w, fc_b)

    fwd = jax.jit(linear_classifier_forward)
    out = fwd(features, w_packed, b_packed)
    out = jax.block_until_ready(out)
    assert out.shape == (batch, N_OUT), out.shape

    ref = linear_classifier_reference(features, fc_w, fc_b)
    max_err = float(jnp.max(jnp.abs(out - ref)))
    scale = 1.0 + float(jnp.max(jnp.abs(ref)))
    # bf16 MXU feed -> not bit-exact vs the f32 PyTorch reference; tolerance
    # loosened per review (~1e-3..1e-2 relative error expected on logits).
    assert max_err < 2e-2 * scale, f"mismatch: max_err={max_err}"

    print("KERNEL_OK")
</pallas_src>

<mosaic_0001>
module attributes {stable_mosaic.version = 11 : i64} {
  func.func @_linear_kernel(%arg0: i32, %arg1: memref<8x500xf32, #tpu.memory_space<vmem>>, %arg2: memref<500x128xbf16, #tpu.memory_space<vmem>>, %arg3: memref<1x128xf32, #tpu.memory_space<vmem>>, %arg4: memref<8x128xf32, #tpu.memory_space<vmem>>) attributes {dimension_semantics = [#tpu.dimension_semantics<parallel>], iteration_bounds = array<i64: 1>, scalar_prefetch = 0 : i64, scratch_operands = 0 : i64, tpu.core_type = #tpu.core_type<tc>, window_params = [{transform_indices = @transform_0, window_bounds = array<i64: 8, 500>}, {pipeline_mode = #tpu.pipeline_mode<synchronous>, transform_indices = @transform_1, window_bounds = array<i64: 500, 128>}, {pipeline_mode = #tpu.pipeline_mode<synchronous>, transform_indices = @transform_2, window_bounds = array<i64: 1, 128>}, {transform_indices = @transform_3, window_bounds = array<i64: 8, 128>}]} {
    %c0 = arith.constant 0 : index
    %c0_0 = arith.constant 0 : index
    %0 = vector.load %arg1[%c0, %c0_0] : memref<8x500xf32, #tpu.memory_space<vmem>>, vector<8x500xf32>
    %1 = arith.truncf %0 : vector<8x500xf32> to vector<8x500xbf16>
    %c0_1 = arith.constant 0 : index
    %c0_2 = arith.constant 0 : index
    %2 = vector.load %arg2[%c0_1, %c0_2] : memref<500x128xbf16, #tpu.memory_space<vmem>>, vector<500x128xbf16>
    %cst = arith.constant dense<0.000000e+00> : vector<8x128xf32>
    %3 = tpu.matmul %1, %2, %cst {dimension_numbers = #tpu.dot_dimension_numbers<[1], [0], [0], [1], [0, 0, 1, 1], [], []>} : vector<8x500xbf16>, vector<500x128xbf16>, vector<8x128xf32> -> vector<8x128xf32>
    %c0_3 = arith.constant 0 : index
    %c0_4 = arith.constant 0 : index
    %4 = vector.load %arg3[%c0_3, %c0_4] : memref<1x128xf32, #tpu.memory_space<vmem>>, vector<1x128xf32>
    %5 = vector.broadcast %4 : vector<1x128xf32> to vector<8x128xf32>
    %6 = arith.addf %3, %5 : vector<8x128xf32>
    %c0_5 = arith.constant 0 : index
    %c0_6 = arith.constant 0 : index
    %7 = vector.load %arg4[%c0_5, %c0_6] : memref<8x128xf32, #tpu.memory_space<vmem>>, vector<8x128xf32>
    tpu.vector_store %arg4[%c0_5, %c0_6], %6 {strides = array<i32>} : memref<8x128xf32, #tpu.memory_space<vmem>>, vector<8x128xf32>,
    return
  }
  func.func @transform_0(%arg0: i32) -> (i32, i32) {
    %c0_i32 = arith.constant 0 : i32
    %c0_i32_0 = arith.constant 0 : i32
    return %arg0, %c0_i32 : i32, i32
  }
  func.func @transform_1(%arg0: i32) -> (i32, i32) {
    %c0_i32 = arith.constant 0 : i32
    %c0_i32_0 = arith.constant 0 : i32
    %c0_i32_1 = arith.constant 0 : i32
    return %c0_i32, %c0_i32_0 : i32, i32
  }
  func.func @transform_2(%arg0: i32) -> (i32, i32) {
    %c0_i32 = arith.constant 0 : i32
    %c0_i32_0 = arith.constant 0 : i32
    %c0_i32_1 = arith.constant 0 : i32
    return %c0_i32, %c0_i32_0 : i32, i32
  }
  func.func @transform_3(%arg0: i32) -> (i32, i32) {
    %c0_i32 = arith.constant 0 : i32
    %c0_i32_0 = arith.constant 0 : i32
    return %arg0, %c0_i32 : i32, i32
  }
}

</mosaic_0001>

<bundles_post_ra>
// kernel: linear_classifier_forward.1
= control target key start
LH: loop header
LB: loop body
LE: loop exit
PB: predicated region body
PF: predicated region fallthrough
CT: control target
= control target key end

     0   :  { %8 = vsyncpa [#allocation3], 0  ;;  %s673_s0 = inlined_call_operand.hbm [shape: f32[8,500], index: 0, kind: input, shape index: {}]   ;;  %s674_s1 = inlined_call_operand.hbm [shape: bf16[500,128], index: 1, kind: input, shape index: {}]   ;;  %s675_s2 = inlined_call_operand.vmem [shape: f32[1,128], index: 2, kind: input, shape index: {}]   ;;  %s676_s3 = inlined_call_operand.hbm [shape: f32[8,128], index: 3, kind: output, shape index: {}]  }
   0x1   :  { %9 = vsyncpa [#allocation6], 0 }
   0x2   :  { %10 = vsyncpa [#allocation4], 0  ;;  %s602_s12 = smov [#allocation2]   ;;  %s603_s14 = smov [#allocation5]  }
   0x3   :  { %s17_s13 = sshll.u32 %s602_s12, 4  ;;  %s26_s15 = sshll.u32 %s603_s14, 4  ;;  %s18_s13 = int_to_ptr.vmem [resolvable:$true] %s17_s13  ;;  %s627_s15 = int_to_ptr.vmem [resolvable:$true] %s26_s15 }
   0x4   :  { %s530_s18 = scalar_lea.hbm %s673_s0, 512 }
   0x5   :  { %p531_p0 = scmp.ne.s32.totalorder %s673_s0, %s530_s18  ;;  %p534_p1 = scmp.lt.u32.totalorder %s530_s18, %s673_s0 }
   0x7   :  { %p536_p2 = pnand %p534_p1, %p531_p0 }
   0x9   :  { %539 = shalt.err (!%p536_p2)
}
   0xa   :  { %s540_s23 = scalar_lea.vmem %s18_s13, 512  ;;  %p545_p4 = scmp.lt.s32.totalorder %s18_s13, %s18_s13 }
   0xb   :  { %p541_p3 = scmp.ne.s32.totalorder %s18_s13, %s540_s23  ;;  %p546_p5 = scmp.lt.s32.totalorder %s540_s23, %s540_s23 }
   0xd   :  { %p547_p6 = por %p546_p5, %p545_p4 }
   0xf   :  { %p548_p7 = pnand %p547_p6, %p541_p3 }
  0x11   :  { %551 = shalt.err (!%p548_p7)
}
  0x12   :  { %20 = dma.hbm_to_vmem [thread:$0]  %s673_s0, 512, %s18_s13, [#allocation3]  }
  0x13   :  { %s552_s28 = scalar_lea.hbm %s674_s1, 4032 }
  0x14   :  { %p553_p8 = scmp.ne.s32.totalorder %s674_s1, %s552_s28  ;;  %p556_p9 = scmp.lt.u32.totalorder %s552_s28, %s674_s1 }
  0x16   :  { %p558_p10 = pnand %p556_p9, %p553_p8 }
  0x18   :  { %561 = shalt.err (!%p558_p10)
}
  0x19   :  { %s562_s6 = scalar_lea.vmem %s627_s15, 4032  ;;  %p567_p12 = scmp.lt.s32.totalorder %s627_s15, %s627_s15 }
  0x1a   :  { %p563_p11 = scmp.ne.s32.totalorder %s627_s15, %s562_s6  ;;  %p568_p13 = scmp.lt.s32.totalorder %s562_s6, %s562_s6 }
  0x1c   :  { %p569_p0 = por %p568_p13, %p567_p12 }
  0x1e   :  { %p570_p1 = pnand %p569_p0, %p563_p11 }
  0x20   :  { %573 = shalt.err (!%p570_p1)
}
  0x21   :  { %s604_s0 = smov 64   ;;  %s605_s7 = smov 4  }
  0x22   :  { %32 = dma.hbm_to_vmem [thread:$0]  %s674_s1, 4032, %s627_s15, [#allocation6], %s604_s0, %s604_s0, %s605_s7  }
  0x23   :  { %596 = dma.done.wait [#allocation3], 512  }
  0x24   :  { %597 = vsyncadd [#allocation3], 4294966784 }
  0x25   :  { %598 = dma.done.wait [#allocation6], 4032  }
  0x26   :  { %599 = vsyncadd [#allocation6], 4294963264  ;;  %v498_v0 = vld [vmem:[#allocation5 + $0x40] sm:$0xff]   ;;  %v502_v4 = vld [vmem:[#allocation5 + $0x48] sm:$0xff]   ;;  %vm313_vm0 = vcmask 1041408   ;;  %vm309_vm1 = vcmask 949248  }
  0x27   :  { %v499_v1 = vld [vmem:[#allocation5 + $0xc0] sm:$0xff]   ;;  %448 = vmatprep.subr.bf16.mxu0 %v498_v0  ;;  %v503_v5 = vld [vmem:[#allocation5 + $0xc8] sm:$0xff]   ;;  %v506_v8 = vld [vmem:[#allocation5 + $0x50] sm:$0xff]   ;;  %s606_s11 = smov [#allocation7]  }
  0x28   :  { %v500_v2 = vld [vmem:[#allocation5] sm:$0xff]   ;;  %470 = vmatprep.subr.bf16.mxu1 %v499_v1  ;;  %v504_v6 = vld [vmem:[#allocation5 + $0x8] sm:$0xff]   ;;  %v507_v9 = vld [vmem:[#allocation5 + $0xd0] sm:$0xff]   ;;  %s404_s12 = sshll.u32 %s606_s11, 4  ;;  %s405_s12 = int_to_ptr.vmem [resolvable:$true] %s404_s12 }
  0x29   :  { %v501_v3 = vld [vmem:[#allocation5 + $0x80] sm:$0xff]   ;;  %449 = vmatpush3.bf16.msra.mxu0 %v500_v2  ;;  %v505_v7 = vld [vmem:[#allocation5 + $0x88] sm:$0xff]   ;;  %v508_v10 = vld [vmem:[#allocation5 + $0x10] sm:$0xff]   ;;  %s574_s13 = scalar_lea.vmem %s405_s12, 128  ;;  %p579_p3 = scmp.lt.s32.totalorder %s405_s12, %s405_s12 }
  0x2a   :  { %471 = vmatpush3.bf16.msra.mxu1 %v501_v3  ;;  %450 = vmatprep.subr.bf16.mxu0 %v502_v4  ;;  %v509_v11 = vld [vmem:[#allocation5 + $0x90] sm:$0xff]   ;;  %v510_v12 = vld [vmem:[#allocation5 + $0x58] sm:$0xff]   ;;  %v514_v16 = vld [vmem:[#allocation5 + $0x60] sm:$0xff]   ;;  %p575_p2 = scmp.ne.s32.totalorder %s405_s12, %s574_s13  ;;  %p580_p4 = scmp.lt.s32.totalorder %s574_s13, %s574_s13 }
  0x2b   :  { %472 = vmatprep.subr.bf16.mxu1 %v503_v5  ;;  %v511_v13 = vld [vmem:[#allocation5 + $0xd8] sm:$0xff]   ;;  %v515_v17 = vld [vmem:[#allocation5 + $0xe0] sm:$0xff]   ;;  %v518_v20 = vld [vmem:[#allocation5 + $0x68] sm:$0xff]  }
  0x2c   :  { %v512_v14 = vld [vmem:[#allocation5 + $0x18] sm:$0xff]   ;;  %v516_v18 = vld [vmem:[#allocation5 + $0x20] sm:$0xff]   ;;  %v519_v21 = vld [vmem:[#allocation5 + $0xe8] sm:$0xff]   ;;  %p581_p5 = por %p580_p4, %p579_p3 }
  0x2d   :  { %451 = vmatpush3.bf16.msra.mxu0 %v504_v6  ;;  %v513_v15 = vld [vmem:[#allocation5 + $0x98] sm:$0xff]   ;;  %v517_v19 = vld [vmem:[#allocation5 + $0xa0] sm:$0xff]   ;;  %v520_v22 = vld [vmem:[#allocation5 + $0x28] sm:$0xff]  }
  0x2e   :  { %473 = vmatpush3.bf16.msra.mxu1 %v505_v7  ;;  %452 = vmatprep.subr.bf16.mxu0 %v506_v8  ;;  %v521_v23 = vld [vmem:[#allocation5 + $0xa8] sm:$0xff]   ;;  %v522_v24 = vld [vmem:[#allocation5 + $0x70] sm:$0xff]   ;;  %v526_v28 = vld [vmem:[#allocation5 + $0x78] sm:$0xff]   ;;  %p582_p6 = pnand %p581_p5, %p575_p2 }
  0x2f   :  { %474 = vmatprep.subr.bf16.mxu1 %v507_v9  ;;  %v523_v25 = vld [vmem:[#allocation5 + $0xf0] sm:$0xff]   ;;  %v527_v29 = vld [vmem:[#allocation5 + $0xf8] ss:$0 sps:$4 sm:$0x33]   ;;  %v43_v32 = vld [vmem:[#allocation2 + $0x8] sm:$0xff] }
  0x30   :  { %v524_v26 = vld [vmem:[#allocation5 + $0x30] sm:$0xff]   ;;  %v528_v30 = vld [vmem:[#allocation5 + $0x38] sm:$0xff]   ;;  %v47_v33 = vpack.c.bf16 %v43_v32, %v43_v32  ;;  %v42_v35 = vld [vmem:[#allocation2] sm:$0xff] }
  0x31   :  { %453 = vmatpush3.bf16.msra.mxu0 %v508_v10  ;;  %v525_v27 = vld [vmem:[#allocation5 + $0xb0] sm:$0xff]   ;;  %v529_v31 = vld [vmem:[#allocation5 + $0xb8] sm:$0xff]   ;;  %v46_v38 = vpack.c.bf16 %v42_v35, %v42_v35  ;;  %v414_v42 = vld [vmem:[%s675_s2] ss:$0 sm:$0xff] }
  0x32   :  { %475 = vmatpush3.bf16.msra.mxu1 %v509_v11  ;;  %454 = vmatprep.subr.bf16.mxu0 %v510_v12  ;;  %v45_v34 = vld [vmem:[#allocation2 + $0x18] sm:$0xff]  ;;  %v44_v36 = vld [vmem:[#allocation2 + $0x10] sm:$0xff] }
  0x33   :  { %476 = vmatprep.subr.bf16.mxu1 %v511_v13  ;;  %v49_v37 = vpack.c.bf16 %v45_v34, %v45_v34  ;;  %v48_v39 = vpack.c.bf16 %v44_v36, %v44_v36  ;;  %349 = vmatprep.mubr.bf16.mxu0 %v47_v33 }
  0x35   :  { %455 = vmatpush3.bf16.msra.mxu0 %v512_v14  ;;  %447 = vmatprep.mubr.msk.bf16.mxu1 %vm309_vm1, %v49_v37 }
  0x36   :  { %477 = vmatpush3.bf16.msra.mxu1 %v513_v15  ;;  %456 = vmatprep.subr.bf16.mxu0 %v514_v16 }
  0x37   :  { %478 = vmatprep.subr.bf16.mxu1 %v515_v17 }
  0x39   :  { %457 = vmatpush3.bf16.msra.mxu0 %v516_v18 }
  0x3a   :  { %479 = vmatpush3.bf16.msra.mxu1 %v517_v19  ;;  %458 = vmatprep.subr.bf16.mxu0 %v518_v20 }
  0x3b   :  { %480 = vmatprep.subr.bf16.mxu1 %v519_v21 }
  0x3d   :  { %459 = vmatpush3.bf16.msra.mxu0 %v520_v22 }
  0x3e   :  { %481 = vmatpush3.bf16.msra.mxu1 %v521_v23  ;;  %460 = vmatprep.subr.bf16.mxu0 %v522_v24 }
  0x3f   :  { %482 = vmatprep.subr.bf16.mxu1 %v523_v25 }
  0x41   :  { %461 = vmatpush3.bf16.msra.mxu0 %v524_v26 }
  0x42   :  { %483 = vmatpush3.bf16.msra.mxu1 %v525_v27  ;;  %462 = vmatprep.subr.bf16.mxu0 %v526_v28 }
  0x43   :  { %492 = vmatprep.subr.msk.bf16.mxu1 %vm313_vm0, %v527_v29 }
  0x45   :  { %463 = vmatpush3.bf16.msra.mxu0 %v528_v30 }
  0x46   :  { %485 = vmatpush3.bf16.msra.mxu1 %v529_v31 }
  0x48   :  { %350 = vmatmul.mubr.bf16.vlgmr.msra.gmra.mrb[0].mxu0 %v46_v38 }
  0x49   :  { %390 = vmatmul.mubr.bf16.vlgmr.msra.gmra.mrb[0].mxu1 %v48_v39 }
 0x11b   :  { %v464_v40 = vpop.f32.mrb[0].mxu0 }
 0x11c   :  { %v486_v41 = vpop.f32.mrb[0].mxu1  ;;  %v465_v43 = vpop.f32.mrb[1].mxu0 }
 0x11d   :  { %v466_v44 = vadd.f32 %v465_v43, %v464_v40  ;;  %v487_v45 = vpop.f32.mrb[1].mxu1  ;;  %v467_v46 = vpop.f32.mrb[2].mxu0 }
 0x11e   :  { %v488_v47 = vadd.f32 %v487_v45, %v486_v41  ;;  %v489_v48 = vpop.f32.mrb[2].mxu1  ;;  %v468_v49 = vpop.f32.mrb[3].mxu0 }
 0x11f   :  { %v352_v50 = vadd.f32 %v466_v44, %v414_v42  ;;  %v490_v51 = vpop.f32.mrb[3].mxu1 }
 0x121   :  { %v392_v52 = vadd.f32 %v488_v47, %v352_v50 }
 0x123   :  { %397 = vst [vmem:[#allocation7] sm:$0xff] %v392_v52 }
 0x124   :  { %585 = shalt.err (!%p582_p6)
}
 0x125   :  { %s586_s15 = scalar_lea.hbm %s676_s3, 128 }
 0x126   :  { %p587_p7 = scmp.ne.s32.totalorder %s676_s3, %s586_s15  ;;  %p590_p8 = scmp.lt.u32.totalorder %s586_s15, %s676_s3 }
 0x128   :  { %p592_p9 = pnand %p590_p8, %p587_p7 }
 0x12a   :  { %595 = shalt.err (!%p592_p9)
}
 0x12b   :  { %407 = dma.vmem_to_hbm [thread:$0]  %s405_s12, 128, %s676_s3, [#allocation4]  }
 0x12c   :  { %600 = dma.done.wait [#allocation4], 128  }
 0x12d   :  { %601 = vsyncadd [#allocation4], 4294967168 }
 0x12e   :  { %411 = vsyncpa [#allocation3], 1 }
 0x12f   :  { %412 = vsyncpa [#allocation6], 1 }
 0x130   :  { %413 = vsyncpa [#allocation4], 1 }

</bundles_post_ra>
